<compile_context>
chip_gen: v6e
topology: v6e:2x2x1
jax: 0.10.0
libtpu: 0.0.40
codegen_flags: <defaults>
</compile_context>

<pallas_src>
import numpy as np
import jax
import jax.numpy as jnp
from jax.experimental import pallas as pl
from jax.experimental.pallas import tpu as pltpu

BN_EPS = 1e-5
LANE = 128
VMEM_LIMIT_BYTES = 32 * 1024 * 1024    # safe on v5e/v6e (128 MiB phys) and v7x (64 MiB phys)
TILE_VMEM_BUDGET = 20 * 1024 * 1024    # data budget used to size the lane tile (two-pass path)
FUSED_VMEM_BUDGET = 10 * 1024 * 1024   # conservative "whole problem in VMEM" threshold


# --------------------------- fused single-call fast path ---------------------------

def _make_fused_kernel(N, HW):
    """Whole problem resident in VMEM: conv + exact batch stats + BN in one kernel."""
    inv_m = 1.0 / float(N * HW)

    def kernel(x_ref, xh_ref, w_ref, g_ref, b_ref, o_ref, oh_ref):
        w = w_ref[...]                                    # (Cout, Cin) bf16
        g = g_ref[...]                                    # (Cout, 1) f32
        b = b_ref[...]                                    # (Cout, 1) f32
        for src, dst in ((x_ref, o_ref), (xh_ref, oh_ref)):
            convs = []
            s = None
            ss = None
            for n in range(N):                            # N is small & static here
                c = jnp.dot(w, src[n].astype(jnp.bfloat16),
                            preferred_element_type=jnp.float32)    # (Cout, HW) f32
                convs.append(c)
                cs = jnp.sum(c, axis=1, keepdims=True)              # (Cout, 1)
                css = jnp.sum(c * c, axis=1, keepdims=True)
                s = cs if s is None else s + cs
                ss = css if ss is None else ss + css
            mean = s * inv_m
            var = jnp.maximum(ss * inv_m - mean * mean, 0.0)
            scale = g * jax.lax.rsqrt(var + BN_EPS)
            bias = b - mean * scale
            for n in range(N):
                dst[n] = (convs[n] * scale + bias).astype(dst.dtype)

    return kernel


def _fused_forward(x3, xh3, w2, gamma, beta, out_dtype):
    N, Cin, HW = x3.shape
    Cout = w2.shape[0]
    g2 = gamma.reshape(Cout, 1).astype(jnp.float32)
    b2 = beta.reshape(Cout, 1).astype(jnp.float32)
    return pl.pallas_call(
        _make_fused_kernel(N, HW),
        out_shape=(jax.ShapeDtypeStruct((N, Cout, HW), out_dtype),
                   jax.ShapeDtypeStruct((N, Cout, HW), out_dtype)),
        compiler_params=pltpu.CompilerParams(vmem_limit_bytes=VMEM_LIMIT_BYTES),
    )(x3, xh3, w2, g2, b2)


# ------------------------------- two-pass tiled path -------------------------------

def _make_stats_kernel(HW, tile_hw):
    """Pass 1: accumulate per-(batch, tensor, channel) sum / sum-of-squares of the
    1x1-conv output.  Output block (1, 2, Cout, 2) is constant along the spatial
    grid axis -> stays resident in VMEM; zeroed at t == 0 (per n) so the N axis
    can be sharded across TensorCores.  Ragged last tile: OOB columns are masked
    to zero (conv has no bias, so they contribute nothing)."""
    ragged = (HW % tile_hw) != 0

    def kernel(x_ref, xh_ref, w_ref, stats_ref):
        t = pl.program_id(1)

        @pl.when(t == 0)
        def _init():
            stats_ref[...] = jnp.zeros_like(stats_ref)

        w = w_ref[...]                                    # (Cout, Cin) bf16
        if ragged:
            cols = t * tile_hw + jax.lax.broadcasted_iota(jnp.int32, (1, tile_hw), 1)
            valid = cols < HW
        for i, src in enumerate((x_ref, xh_ref)):
            xt = src[0]                                   # (Cin, tile_hw) f32
            if ragged:
                xt = jnp.where(valid, xt, 0.0)            # zero OOB columns
            conv = jnp.dot(w, xt.astype(jnp.bfloat16),
                           preferred_element_type=jnp.float32)      # (Cout, tile_hw)
            s = jnp.sum(conv, axis=1, keepdims=True)                # (Cout, 1)
            ss = jnp.sum(conv * conv, axis=1, keepdims=True)        # (Cout, 1)
            stats_ref[0, i] += jnp.concatenate([s, ss], axis=1)     # single (Cout,2) RMW

    return kernel


def _apply_kernel(x_ref, xh_ref, w_ref, scale_ref, bias_ref, o_ref, oh_ref):
    """Pass 2: recompute the cheap 1x1 conv (W @ X, spatial in lanes) and apply the
    folded BatchNorm affine.  Lane-dense unpadded stores; OOB columns of a ragged
    last tile are dropped by Pallas.  Fully parallel grid."""
    w = w_ref[...]                                        # (Cout, Cin) bf16
    for i, (src, dst) in enumerate(((x_ref, o_ref), (xh_ref, oh_ref))):
        conv = jnp.dot(w, src[0].astype(jnp.bfloat16),
                       preferred_element_type=jnp.float32)          # (Cout, tile_hw) f32
        dst[0] = (conv * scale_ref[i] + bias_ref[i]).astype(dst.dtype)


def _two_pass_forward(x3, xh3, w2, gamma, beta, out_dtype):
    N, Cin, HW = x3.shape
    Cout = w2.shape[0]
    out_bytes = jnp.dtype(out_dtype).itemsize

    # VMEM-budget-aware lane tile: double-buffered f32 inputs + out_dtype outputs
    # for both tensors dominate (pass 2).  Multiple of 128, capped at the
    # rounded-up full spatial extent.
    per_col = 2 * 2 * Cin * 4 + 2 * 2 * Cout * out_bytes
    hw_cap = pl.cdiv(HW, LANE) * LANE
    tile_hw = max(LANE, min(hw_cap, (TILE_VMEM_BUDGET // per_col) // LANE * LANE))
    n_t = pl.cdiv(HW, tile_hw)

    # ---- pass 1: per-(n, tensor, channel) sum / sumsq of the conv output ----
    stats = pl.pallas_call(
        _make_stats_kernel(HW, tile_hw),
        out_shape=jax.ShapeDtypeStruct((N, 2, Cout, 2), jnp.float32),
        grid_spec=pltpu.PrefetchScalarGridSpec(
            num_scalar_prefetch=0,
            grid=(N, n_t),
            in_specs=[
                pl.BlockSpec((1, Cin, tile_hw), lambda n, t: (n, 0, t)),
                pl.BlockSpec((1, Cin, tile_hw), lambda n, t: (n, 0, t)),
                pl.BlockSpec((Cout, Cin), lambda n, t: (0, 0)),
            ],
            out_specs=pl.BlockSpec((1, 2, Cout, 2), lambda n, t: (n, 0, 0, 0)),
        ),
        compiler_params=pltpu.CompilerParams(
            dimension_semantics=("parallel", "arbitrary"),
            vmem_limit_bytes=VMEM_LIMIT_BYTES),
    )(x3, xh3, w2)

    # ---- fold BN into one scale/bias per (tensor, channel): tiny XLA glue ----
    M = N * HW
    s = jnp.sum(stats, axis=0)                            # (2, Cout, 2)
    mean = s[:, :, 0] / M
    # NOTE: variance via E[x^2]-E[x]^2 in a single f32 pass; adequate for
    # conv outputs of ~unit scale (documented precision trade-off).
    var = jnp.maximum(s[:, :, 1] / M - mean * mean, 0.0)
    g = gamma.reshape(1, Cout).astype(jnp.float32)
    b = beta.reshape(1, Cout).astype(jnp.float32)
    scale = g * jax.lax.rsqrt(var + BN_EPS)               # (2, Cout)
    bias = b - mean * scale
    scale3 = scale[:, :, None]                            # (2, Cout, 1)
    bias3 = bias[:, :, None]

    # ---- pass 2: conv + folded BN, lane-dense unpadded bf16 stores ----
    out3, outh3 = pl.pallas_call(
        _apply_kernel,
        out_shape=(jax.ShapeDtypeStruct((N, Cout, HW), out_dtype),
                   jax.ShapeDtypeStruct((N, Cout, HW), out_dtype)),
        grid_spec=pltpu.PrefetchScalarGridSpec(
            num_scalar_prefetch=0,
            grid=(N, n_t),
            in_specs=[
                pl.BlockSpec((1, Cin, tile_hw), lambda n, t: (n, 0, t)),
                pl.BlockSpec((1, Cin, tile_hw), lambda n, t: (n, 0, t)),
                pl.BlockSpec((Cout, Cin), lambda n, t: (0, 0)),
                pl.BlockSpec((2, Cout, 1), lambda n, t: (0, 0, 0)),
                pl.BlockSpec((2, Cout, 1), lambda n, t: (0, 0, 0)),
            ],
            out_specs=[
                pl.BlockSpec((1, Cout, tile_hw), lambda n, t: (n, 0, t)),
                pl.BlockSpec((1, Cout, tile_hw), lambda n, t: (n, 0, t)),
            ],
        ),
        compiler_params=pltpu.CompilerParams(
            dimension_semantics=("parallel", "parallel"),
            vmem_limit_bytes=VMEM_LIMIT_BYTES),
    )(x3, xh3, w2, scale3, bias3)
    return out3, outh3


# ----------------------------------- public entry -----------------------------------

def shortcut_forward(x, x_hash, w_full, gamma, beta, stride=1,
                     out_dtype=jnp.bfloat16, force_two_pass=False):
    """x, x_hash: (N, Cin, H, W) NCHW f32.  w_full: (Cout, Cin, 1, 1).
    Returns (out, out_hash) in NCHW (out_dtype), matching ShortCut.forward with
    train-mode BatchNorm (per-tensor batch statistics, shared gamma/beta)."""
    N, Cin, H, W = x.shape
    Cout = w_full.shape[0]
    assert w_full.shape[2] == 1 and w_full.shape[3] == 1, "only kernel_size=1 supported"

    if stride > 1:
        x = x[:, :, ::stride, ::stride]
        x_hash = x_hash[:, :, ::stride, ::stride]
    Ho, Wo = x.shape[2], x.shape[3]
    HW = Ho * Wo

    # Free reshapes of contiguous NCHW; inputs stay f32 in HBM (bf16 cast in-kernel).
    x3 = x.reshape(N, Cin, HW)
    xh3 = x_hash.reshape(N, Cin, HW)
    w2 = w_full.reshape(Cout, Cin).astype(jnp.bfloat16)   # W @ X orientation

    out_bytes = jnp.dtype(out_dtype).itemsize
    fused_bytes = (2 * N * Cin * HW * 4                   # both inputs resident (f32)
                   + 2 * N * Cout * HW * out_bytes        # both outputs resident
                   + N * Cout * HW * 4)                   # f32 conv temps (one tensor at a time)
    if (not force_two_pass) and fused_bytes <= FUSED_VMEM_BUDGET:
        out3, outh3 = _fused_forward(x3, xh3, w2, gamma, beta, out_dtype)
    else:
        out3, outh3 = _two_pass_forward(x3, xh3, w2, gamma, beta, out_dtype)

    return out3.reshape(N, Cout, Ho, Wo), outh3.reshape(N, Cout, Ho, Wo)


# --------------------------------- helpers / reference ---------------------------------

def make_hashed_conv_weight(key, in_planes, expansion_planes, buckets):
    """Deterministic HashedConv2d-style weight: gather the full (Cout,Cin,1,1) weight
    from `buckets` shared params via a polynomial hash of the flat index."""
    n = expansion_planes * in_planes
    bucket_vals = jax.random.normal(key, (buckets,), dtype=jnp.float32) / np.sqrt(in_planes)
    idx = np.arange(n, dtype=np.int64)
    hash_idx = ((17 * idx * idx + 31 * idx + 7) % buckets).astype(np.int32)
    w_full = bucket_vals[jnp.asarray(hash_idx)].reshape(expansion_planes, in_planes, 1, 1)
    return w_full


def _reference(x, x_hash, w_full, gamma, beta, stride=1):
    """Pure-JAX f32 reference (NCHW), train-mode BatchNorm."""
    def one(a):
        if stride > 1:
            a = a[:, :, ::stride, ::stride]
        N, Cin, H, W = a.shape
        Cout = w_full.shape[0]
        out = jnp.einsum('nchw,oc->nohw', a, w_full.reshape(Cout, Cin))
        mean = jnp.mean(out, axis=(0, 2, 3), keepdims=True)
        var = jnp.mean((out - mean) ** 2, axis=(0, 2, 3), keepdims=True)
        norm = (out - mean) / jnp.sqrt(var + BN_EPS)
        return norm * gamma.reshape(1, Cout, 1, 1) + beta.reshape(1, Cout, 1, 1)
    return one(x), one(x_hash)


if __name__ == "__main__":
    key = jax.random.PRNGKey(0)
    k_x, k_h, k_w, k_g, k_b = jax.random.split(key, 5)

    # Small shapes consistent with a ResNet shortcut: in_planes=4 -> expansion_planes=16.
    N, in_planes, H, W = 2, 4, 16, 16
    expansion_planes, buckets = 16, 16

    x = jax.random.normal(k_x, (N, in_planes, H, W), dtype=jnp.float32)
    x_hash = jax.random.normal(k_h, (N, in_planes, H, W), dtype=jnp.float32)
    w_full = make_hashed_conv_weight(k_w, in_planes, expansion_planes, buckets)
    gamma = 1.0 + 0.1 * jax.random.normal(k_g, (expansion_planes,), jnp.float32)
    beta = 0.1 * jax.random.normal(k_b, (expansion_planes,), jnp.float32)

    # Kernel matmul inputs / outputs are bf16 (per perf guidance); reference is pure
    # f32, so compare at bf16-quantization tolerance.  Stats/BN math is f32.
    def check(got, want):
        np.testing.assert_allclose(np.asarray(got.astype(jnp.float32)),
                                   np.asarray(want), rtol=2e-2, atol=2e-2)

    # 1) default dispatch (small problem -> fused single-kernel path)
    out, out_hash = shortcut_forward(x, x_hash, w_full, gamma, beta, stride=1)
    jax.block_until_ready((out, out_hash))
    ref, ref_hash = _reference(x, x_hash, w_full, gamma, beta, stride=1)
    check(out, ref)
    check(out_hash, ref_hash)

    # 2) tiled two-pass path on the same inputs
    out2, out2_hash = shortcut_forward(x, x_hash, w_full, gamma, beta, stride=1,
                                       force_two_pass=True)
    jax.block_until_ready((out2, out2_hash))
    check(out2, ref)
    check(out2_hash, ref_hash)

    # 3) strided shortcut -> ragged spatial extent (HW=64 < 128-lane tile) on the
    #    two-pass path, exercising the in-kernel OOB-column masking.
    out3, out3_hash = shortcut_forward(x, x_hash, w_full, gamma, beta, stride=2,
                                       force_two_pass=True)
    jax.block_until_ready((out3, out3_hash))
    ref3, ref3_hash = _reference(x, x_hash, w_full, gamma, beta, stride=2)
    check(out3, ref3)
    check(out3_hash, ref3_hash)

    print("KERNEL_OK")
</pallas_src>

<mosaic_0001>
module attributes {stable_mosaic.version = 11 : i64} {
  func.func @kernel(%arg0: memref<2x4x256xf32, #tpu.memory_space<vmem>>, %arg1: memref<2x4x256xf32, #tpu.memory_space<vmem>>, %arg2: memref<16x4xbf16, #tpu.memory_space<vmem>>, %arg3: memref<16x1xf32, #tpu.memory_space<vmem>>, %arg4: memref<16x1xf32, #tpu.memory_space<vmem>>, %arg5: memref<2x16x256xbf16, #tpu.memory_space<vmem>>, %arg6: memref<2x16x256xbf16, #tpu.memory_space<vmem>>) attributes {dimension_semantics = [], scalar_prefetch = 0 : i64, scratch_operands = 0 : i64, tpu.core_type = #tpu.core_type<tc>} {
    %c0 = arith.constant 0 : index
    %c0_0 = arith.constant 0 : index
    %0 = vector.load %arg2[%c0, %c0_0] : memref<16x4xbf16, #tpu.memory_space<vmem>>, vector<16x4xbf16>
    %c0_1 = arith.constant 0 : index
    %c0_2 = arith.constant 0 : index
    %1 = vector.load %arg3[%c0_1, %c0_2] : memref<16x1xf32, #tpu.memory_space<vmem>>, vector<16x1xf32>
    %c0_3 = arith.constant 0 : index
    %c0_4 = arith.constant 0 : index
    %2 = vector.load %arg4[%c0_3, %c0_4] : memref<16x1xf32, #tpu.memory_space<vmem>>, vector<16x1xf32>
    %c0_5 = arith.constant 0 : index
    %c0_6 = arith.constant 0 : index
    %c0_7 = arith.constant 0 : index
    %3 = vector.load %arg0[%c0_5, %c0_6, %c0_7] : memref<2x4x256xf32, #tpu.memory_space<vmem>>, vector<1x4x256xf32>
    %4 = vector.shape_cast %3 : vector<1x4x256xf32> to vector<4x256xf32>
    %5 = arith.truncf %4 : vector<4x256xf32> to vector<4x256xbf16>
    %cst = arith.constant dense<0.000000e+00> : vector<16x256xf32>
    %6 = tpu.matmul %0, %5, %cst {dimension_numbers = #tpu.dot_dimension_numbers<[1], [0], [0], [1], [0, 0, 1, 1], [], []>} : vector<16x4xbf16>, vector<4x256xbf16>, vector<16x256xf32> -> vector<16x256xf32>
    %cst_8 = arith.constant dense<0.000000e+00> : vector<16xf32>
    %7 = vector.multi_reduction <add>, %6, %cst_8 [1] : vector<16x256xf32> to vector<16xf32>
    %8 = vector.shape_cast %7 : vector<16xf32> to vector<16x1xf32>
    %9 = arith.mulf %6, %6 : vector<16x256xf32>
    %cst_9 = arith.constant dense<0.000000e+00> : vector<16xf32>
    %10 = vector.multi_reduction <add>, %9, %cst_9 [1] : vector<16x256xf32> to vector<16xf32>
    %11 = vector.shape_cast %10 : vector<16xf32> to vector<16x1xf32>
    %c1 = arith.constant 1 : index
    %c0_10 = arith.constant 0 : index
    %c0_11 = arith.constant 0 : index
    %12 = vector.load %arg0[%c1, %c0_10, %c0_11] : memref<2x4x256xf32, #tpu.memory_space<vmem>>, vector<1x4x256xf32>
    %13 = vector.shape_cast %12 : vector<1x4x256xf32> to vector<4x256xf32>
    %14 = arith.truncf %13 : vector<4x256xf32> to vector<4x256xbf16>
    %cst_12 = arith.constant dense<0.000000e+00> : vector<16x256xf32>
    %15 = tpu.matmul %0, %14, %cst_12 {dimension_numbers = #tpu.dot_dimension_numbers<[1], [0], [0], [1], [0, 0, 1, 1], [], []>} : vector<16x4xbf16>, vector<4x256xbf16>, vector<16x256xf32> -> vector<16x256xf32>
    %cst_13 = arith.constant dense<0.000000e+00> : vector<16xf32>
    %16 = vector.multi_reduction <add>, %15, %cst_13 [1] : vector<16x256xf32> to vector<16xf32>
    %17 = vector.shape_cast %16 : vector<16xf32> to vector<16x1xf32>
    %18 = arith.mulf %15, %15 : vector<16x256xf32>
    %cst_14 = arith.constant dense<0.000000e+00> : vector<16xf32>
    %19 = vector.multi_reduction <add>, %18, %cst_14 [1] : vector<16x256xf32> to vector<16xf32>
    %20 = vector.shape_cast %19 : vector<16xf32> to vector<16x1xf32>
    %21 = arith.addf %8, %17 : vector<16x1xf32>
    %22 = arith.addf %11, %20 : vector<16x1xf32>
    %cst_15 = arith.constant 0.001953125 : f32
    %23 = vector.broadcast %cst_15 : f32 to vector<16x1xf32>
    %24 = arith.mulf %21, %23 : vector<16x1xf32>
    %cst_16 = arith.constant 0.001953125 : f32
    %25 = vector.broadcast %cst_16 : f32 to vector<16x1xf32>
    %26 = arith.mulf %22, %25 : vector<16x1xf32>
    %27 = arith.mulf %24, %24 : vector<16x1xf32>
    %28 = arith.subf %26, %27 : vector<16x1xf32>
    %cst_17 = arith.constant 0.000000e+00 : f32
    %29 = vector.broadcast %cst_17 : f32 to vector<16x1xf32>
    %30 = arith.maximumf %28, %29 : vector<16x1xf32>
    %cst_18 = arith.constant 9.99999974E-6 : f32
    %31 = vector.broadcast %cst_18 : f32 to vector<16x1xf32>
    %32 = arith.addf %30, %31 : vector<16x1xf32>
    %33 = math.rsqrt %32 : vector<16x1xf32>
    %34 = arith.mulf %1, %33 : vector<16x1xf32>
    %35 = arith.mulf %24, %34 : vector<16x1xf32>
    %36 = arith.subf %2, %35 : vector<16x1xf32>
    %37 = vector.broadcast %34 : vector<16x1xf32> to vector<16x256xf32>
    %38 = arith.mulf %6, %37 : vector<16x256xf32>
    %39 = vector.broadcast %36 : vector<16x1xf32> to vector<16x256xf32>
    %40 = arith.addf %38, %39 : vector<16x256xf32>
    %41 = arith.truncf %40 : vector<16x256xf32> to vector<16x256xbf16>
    %c0_19 = arith.constant 0 : index
    %c0_20 = arith.constant 0 : index
    %c0_21 = arith.constant 0 : index
    %42 = vector.load %arg5[%c0_19, %c0_20, %c0_21] : memref<2x16x256xbf16, #tpu.memory_space<vmem>>, vector<1x16x256xbf16>
    %43 = vector.shape_cast %42 : vector<1x16x256xbf16> to vector<16x256xbf16>
    %44 = vector.shape_cast %41 : vector<16x256xbf16> to vector<1x16x256xbf16>
    tpu.vector_store %arg5[%c0_19, %c0_20, %c0_21], %44 {strides = array<i32>} : memref<2x16x256xbf16, #tpu.memory_space<vmem>>, vector<1x16x256xbf16>,
    %45 = vector.broadcast %34 : vector<16x1xf32> to vector<16x256xf32>
    %46 = arith.mulf %15, %45 : vector<16x256xf32>
    %47 = vector.broadcast %36 : vector<16x1xf32> to vector<16x256xf32>
    %48 = arith.addf %46, %47 : vector<16x256xf32>
    %49 = arith.truncf %48 : vector<16x256xf32> to vector<16x256xbf16>
    %c1_22 = arith.constant 1 : index
    %c0_23 = arith.constant 0 : index
    %c0_24 = arith.constant 0 : index
    %50 = vector.load %arg5[%c1_22, %c0_23, %c0_24] : memref<2x16x256xbf16, #tpu.memory_space<vmem>>, vector<1x16x256xbf16>
    %51 = vector.shape_cast %50 : vector<1x16x256xbf16> to vector<16x256xbf16>
    %52 = vector.shape_cast %49 : vector<16x256xbf16> to vector<1x16x256xbf16>
    tpu.vector_store %arg5[%c1_22, %c0_23, %c0_24], %52 {strides = array<i32>} : memref<2x16x256xbf16, #tpu.memory_space<vmem>>, vector<1x16x256xbf16>,
    %c0_25 = arith.constant 0 : index
    %c0_26 = arith.constant 0 : index
    %c0_27 = arith.constant 0 : index
    %53 = vector.load %arg1[%c0_25, %c0_26, %c0_27] : memref<2x4x256xf32, #tpu.memory_space<vmem>>, vector<1x4x256xf32>
    %54 = vector.shape_cast %53 : vector<1x4x256xf32> to vector<4x256xf32>
    %55 = arith.truncf %54 : vector<4x256xf32> to vector<4x256xbf16>
    %cst_28 = arith.constant dense<0.000000e+00> : vector<16x256xf32>
    %56 = tpu.matmul %0, %55, %cst_28 {dimension_numbers = #tpu.dot_dimension_numbers<[1], [0], [0], [1], [0, 0, 1, 1], [], []>} : vector<16x4xbf16>, vector<4x256xbf16>, vector<16x256xf32> -> vector<16x256xf32>
    %cst_29 = arith.constant dense<0.000000e+00> : vector<16xf32>
    %57 = vector.multi_reduction <add>, %56, %cst_29 [1] : vector<16x256xf32> to vector<16xf32>
    %58 = vector.shape_cast %57 : vector<16xf32> to vector<16x1xf32>
    %59 = arith.mulf %56, %56 : vector<16x256xf32>
    %cst_30 = arith.constant dense<0.000000e+00> : vector<16xf32>
    %60 = vector.multi_reduction <add>, %59, %cst_30 [1] : vector<16x256xf32> to vector<16xf32>
    %61 = vector.shape_cast %60 : vector<16xf32> to vector<16x1xf32>
    %c1_31 = arith.constant 1 : index
    %c0_32 = arith.constant 0 : index
    %c0_33 = arith.constant 0 : index
    %62 = vector.load %arg1[%c1_31, %c0_32, %c0_33] : memref<2x4x256xf32, #tpu.memory_space<vmem>>, vector<1x4x256xf32>
    %63 = vector.shape_cast %62 : vector<1x4x256xf32> to vector<4x256xf32>
    %64 = arith.truncf %63 : vector<4x256xf32> to vector<4x256xbf16>
    %cst_34 = arith.constant dense<0.000000e+00> : vector<16x256xf32>
    %65 = tpu.matmul %0, %64, %cst_34 {dimension_numbers = #tpu.dot_dimension_numbers<[1], [0], [0], [1], [0, 0, 1, 1], [], []>} : vector<16x4xbf16>, vector<4x256xbf16>, vector<16x256xf32> -> vector<16x256xf32>
    %cst_35 = arith.constant dense<0.000000e+00> : vector<16xf32>
    %66 = vector.multi_reduction <add>, %65, %cst_35 [1] : vector<16x256xf32> to vector<16xf32>
    %67 = vector.shape_cast %66 : vector<16xf32> to vector<16x1xf32>
    %68 = arith.mulf %65, %65 : vector<16x256xf32>
    %cst_36 = arith.constant dense<0.000000e+00> : vector<16xf32>
    %69 = vector.multi_reduction <add>, %68, %cst_36 [1] : vector<16x256xf32> to vector<16xf32>
    %70 = vector.shape_cast %69 : vector<16xf32> to vector<16x1xf32>
    %71 = arith.addf %58, %67 : vector<16x1xf32>
    %72 = arith.addf %61, %70 : vector<16x1xf32>
    %cst_37 = arith.constant 0.001953125 : f32
    %73 = vector.broadcast %cst_37 : f32 to vector<16x1xf32>
    %74 = arith.mulf %71, %73 : vector<16x1xf32>
    %cst_38 = arith.constant 0.001953125 : f32
    %75 = vector.broadcast %cst_38 : f32 to vector<16x1xf32>
    %76 = arith.mulf %72, %75 : vector<16x1xf32>
    %77 = arith.mulf %74, %74 : vector<16x1xf32>
    %78 = arith.subf %76, %77 : vector<16x1xf32>
    %cst_39 = arith.constant 0.000000e+00 : f32
    %79 = vector.broadcast %cst_39 : f32 to vector<16x1xf32>
    %80 = arith.maximumf %78, %79 : vector<16x1xf32>
    %cst_40 = arith.constant 9.99999974E-6 : f32
    %81 = vector.broadcast %cst_40 : f32 to vector<16x1xf32>
    %82 = arith.addf %80, %81 : vector<16x1xf32>
    %83 = math.rsqrt %82 : vector<16x1xf32>
    %84 = arith.mulf %1, %83 : vector<16x1xf32>
    %85 = arith.mulf %74, %84 : vector<16x1xf32>
    %86 = arith.subf %2, %85 : vector<16x1xf32>
    %87 = vector.broadcast %84 : vector<16x1xf32> to vector<16x256xf32>
    %88 = arith.mulf %56, %87 : vector<16x256xf32>
    %89 = vector.broadcast %86 : vector<16x1xf32> to vector<16x256xf32>
    %90 = arith.addf %88, %89 : vector<16x256xf32>
    %91 = arith.truncf %90 : vector<16x256xf32> to vector<16x256xbf16>
    %c0_41 = arith.constant 0 : index
    %c0_42 = arith.constant 0 : index
    %c0_43 = arith.constant 0 : index
    %92 = vector.load %arg6[%c0_41, %c0_42, %c0_43] : memref<2x16x256xbf16, #tpu.memory_space<vmem>>, vector<1x16x256xbf16>
    %93 = vector.shape_cast %92 : vector<1x16x256xbf16> to vector<16x256xbf16>
    %94 = vector.shape_cast %91 : vector<16x256xbf16> to vector<1x16x256xbf16>
    tpu.vector_store %arg6[%c0_41, %c0_42, %c0_43], %94 {strides = array<i32>} : memref<2x16x256xbf16, #tpu.memory_space<vmem>>, vector<1x16x256xbf16>,
    %95 = vector.broadcast %84 : vector<16x1xf32> to vector<16x256xf32>
    %96 = arith.mulf %65, %95 : vector<16x256xf32>
    %97 = vector.broadcast %86 : vector<16x1xf32> to vector<16x256xf32>
    %98 = arith.addf %96, %97 : vector<16x256xf32>
    %99 = arith.truncf %98 : vector<16x256xf32> to vector<16x256xbf16>
    %c1_44 = arith.constant 1 : index
    %c0_45 = arith.constant 0 : index
    %c0_46 = arith.constant 0 : index
    %100 = vector.load %arg6[%c1_44, %c0_45, %c0_46] : memref<2x16x256xbf16, #tpu.memory_space<vmem>>, vector<1x16x256xbf16>
    %101 = vector.shape_cast %100 : vector<1x16x256xbf16> to vector<16x256xbf16>
    %102 = vector.shape_cast %99 : vector<16x256xbf16> to vector<1x16x256xbf16>
    tpu.vector_store %arg6[%c1_44, %c0_45, %c0_46], %102 {strides = array<i32>} : memref<2x16x256xbf16, #tpu.memory_space<vmem>>, vector<1x16x256xbf16>,
    return
  }
}

</mosaic_0001>

<bundles_post_ra>
// kernel: tpu_custom_call.1
= control target key start
LH: loop header
LB: loop body
LE: loop exit
PB: predicated region body
PF: predicated region fallthrough
CT: control target
= control target key end

     0   :  { %12 = vsyncpa [#allocation3], 0  ;;  %vm46_vm0 = vcmask 1041408   ;;  %v628_v6 = vmov 0   ;;  %s811_s0 = inlined_call_operand.vmem [shape: f32[2,4,256], index: 0, kind: input, shape index: {}]   ;;  %s812_s1 = inlined_call_operand.vmem [shape: f32[2,4,256], index: 1, kind: input, shape index: {}]   ;;  %s813_s2 = inlined_call_operand.vmem [shape: bf16[16,4], index: 2, kind: input, shape index: {}]   ;;  %s814_s3 = inlined_call_operand.vmem [shape: f32[16,1], index: 3, kind: input, shape index: {}]   ;;  %s815_s4 = inlined_call_operand.vmem [shape: f32[16,1], index: 4, kind: input, shape index: {}]   ;;  %s816_s5 = inlined_call_operand.hbm [shape: bf16[2,16,256], index: 5, kind: output, shape index: {0}]   ;;  %s817_s6 = inlined_call_operand.hbm [shape: bf16[2,16,256], index: 6, kind: output, shape index: {1}]  }
   0x1   :  { %v31_v0 = vld [vmem:[%s811_s0] sm:$0xff]  ;;  %v540_v1 = vld [vmem:[%s811_s0 + $0x8] sm:$0xff]  ;;  %85 = vmatprep.mubr.bf16.mxu0 %v628_v6  ;;  %157 = vmatprep.mubr.bf16.mxu1 %v628_v6 }
   0x2   :  { %v33_v2 = vcombine.high %v31_v0, %v31_v0  ;;  %v115_v3 = vcombine.high %v540_v1, %v540_v1  ;;  %v35_v4 = vpack.c.bf16 %v31_v0, %v31_v0  ;;  %v117_v5 = vpack.c.bf16 %v540_v1, %v540_v1  ;;  %v273_v7 = vld [vmem:[%s812_s1] sm:$0xff]  ;;  %v549_v10 = vld [vmem:[%s812_s1 + $0x8] sm:$0xff]  ;;  %569 = vset.pattern.permute.xlu0 %v628_v6 }
   0x3   :  { %v275_v8 = vcombine.high %v273_v7, %v273_v7  ;;  %v277_v9 = vpack.c.bf16 %v273_v7, %v273_v7 }
   0x4   :  { %13 = vsyncpa [#allocation5], 0  ;;  %v36_v11 = vpack.c.bf16 %v33_v2, %v33_v2  ;;  %v118_v12 = vpack.c.bf16 %v115_v3, %v115_v3  ;;  %v48_v13 = vsel %vm46_vm0, %v35_v4, 0  ;;  %v120_v14 = vsel %vm46_vm0, %v117_v5, 0  ;;  %570 = vset.pattern.permute.xlu1 %v628_v6  ;;  %v573_v18 = vld [vmem:[%s813_s2] sm:$0xff]  }
   0x5   :  { %v278_v15 = vpack.c.bf16 %v275_v8, %v275_v8  ;;  %v347_v16 = vcombine.high %v549_v10, %v549_v10  ;;  %v349_v17 = vpack.c.bf16 %v549_v10, %v549_v10  ;;  %vm42_vm1 = vcmask 31744  }
   0x6   :  { %538 = vmatprep.subr.msk.bf16.mxu0 %vm46_vm0, %v36_v11  ;;  %541 = vmatprep.subr.msk.bf16.mxu1 %vm46_vm0, %v118_v12  ;;  %v280_v20 = vsel %vm46_vm0, %v277_v9, 0 }
   0x7   :  { %68 = vmatpush1.bf16.msra.mxu0 %v48_v13  ;;  %140 = vmatpush1.bf16.msra.mxu1 %v120_v14  ;;  %v350_v19 = vpack.c.bf16 %v347_v16, %v347_v16  ;;  %v352_v21 = vsel %vm46_vm0, %v349_v17, 0 }
   0x8   :  { %547 = vmatprep.subr.msk.bf16.mxu0 %vm46_vm0, %v278_v15 }
   0x9   :  { %550 = vmatprep.subr.msk.bf16.mxu1 %vm46_vm0, %v350_v19 }
   0xa   :  { %539 = vmatmul.mubr.msk.bf16.vlgmr.msra.gmra.mxu0 %vm42_vm1, %v573_v18  ;;  %542 = vmatmul.mubr.msk.bf16.vlgmr.msra.gmra.mxu1 %vm42_vm1, %v573_v18 }
   0xb   :  { %300 = vmatpush1.bf16.msra.mxu0 %v280_v20  ;;  %317 = vmatprep.mubr.bf16.mxu0 %v628_v6 }
   0xc   :  { %372 = vmatpush1.bf16.msra.mxu1 %v352_v21  ;;  %389 = vmatprep.mubr.bf16.mxu1 %v628_v6 }
  0x12   :  { %548 = vmatmul.mubr.msk.bf16.vlgmr.msra.gmra.mxu0 %vm42_vm1, %v573_v18  ;;  %551 = vmatmul.mubr.msk.bf16.vlgmr.msra.gmra.mxu1 %vm42_vm1, %v573_v18 }
  0xca   :  { %v691_v22 = vpop.f32.mrf.mxu0  ;;  %v693_v23 = vpop.f32.mrf.mxu1 }
  0xcb   :  { %v102_v31 = vmul.f32 %v691_v22, %v691_v22  ;;  %v174_v34 = vmul.f32 %v693_v23, %v693_v23 }
  0xcc   :  { %v695_v24 = vpop.f32.mrf.mxu0  ;;  %v697_v25 = vpop.f32.mrf.mxu1 }
  0xcd   :  { %v168_v26 = vadd.f32 %v697_v25, %v693_v23  ;;  %v96_v27 = vadd.f32 %v695_v24, %v691_v22  ;;  %v103_v28 = vmul.f32 %v695_v24, %v695_v24  ;;  %v175_v37 = vmul.f32 %v697_v25, %v697_v25 }
  0xce   :  { %v705_v29 = vpop.f32.mrf.mxu0  ;;  %v707_v30 = vpop.f32.mrf.mxu1 }
  0xcf   :  { %169 = vadd.xlane.f32.xlu1 %v168_v26  ;;  %97 = vadd.xlane.f32.xlu0 %v96_v27  ;;  %v106_v36 = vadd.f32 %v103_v28, %v102_v31  ;;  %v104_v41 = vmul.f32 %v705_v29, %v705_v29  ;;  %v178_v43 = vadd.f32 %v175_v37, %v174_v34 }
  0xd0   :  { %v711_v32 = vpop.f32.mrf.mxu0  ;;  %v713_v33 = vpop.f32.mrf.mxu1  ;;  %v176_v45 = vmul.f32 %v707_v30, %v707_v30 }
  0xd1   :  { %v171_v35 = vadd.f32 %v713_v33, %v707_v30  ;;  %v105_v38 = vmul.f32 %v711_v32, %v711_v32  ;;  %v177_v46 = vmul.f32 %v713_v33, %v713_v33  ;;  %v99_v50 = vadd.f32 %v711_v32, %v705_v29 }
  0xd2   :  { %v723_v39 = vpop.f32.mrf.mxu0  ;;  %v725_v40 = vpop.f32.mrf.mxu1 }
  0xd3   :  { %172 = vadd.xlane.f32.xlu1 %v171_v35  ;;  %107 = vadd.xlane.f32.xlu0 %v106_v36  ;;  %v109_v44 = vadd.f32 %v105_v38, %v104_v41  ;;  %v181_v49 = vadd.f32 %v177_v46, %v176_v45  ;;  %v334_v57 = vmul.f32 %v723_v39, %v723_v39 }
  0xd4   :  { %v729_v42 = vpop.f32.mrf.mxu0  ;;  %v737_v48 = vpop.f32.mrf.mxu1  ;;  %v406_v62 = vmul.f32 %v725_v40, %v725_v40 }
  0xd5   :  { %v328_v54 = vadd.f32 %v729_v42, %v723_v39  ;;  %v400_v56 = vadd.f32 %v737_v48, %v725_v40  ;;  %v335_v61 = vmul.f32 %v729_v42, %v729_v42  ;;  %v407_v63 = vmul.f32 %v737_v48, %v737_v48 }
  0xd6   :  { %v735_v47 = vpop.f32.mrf.mxu0  ;;  %v743_v52 = vpop.f32.mrf.mxu1 }
  0xd7   :  { %179 = vadd.xlane.f32.xlu0 %v178_v43  ;;  %110 = vadd.xlane.f32.xlu1 %v109_v44  ;;  %v336_v60 = vmul.f32 %v735_v47, %v735_v47  ;;  %v338_v2 = vadd.f32 %v335_v61, %v334_v57  ;;  %v408_v3 = vmul.f32 %v743_v52, %v743_v52 }
  0xd8   :  { %v741_v51 = vpop.f32.mrf.mxu0  ;;  %v749_v55 = vpop.f32.mrf.mxu1  ;;  %v410_v5 = vadd.f32 %v407_v63, %v406_v62 }
  0xd9   :  { %v331_v53 = vadd.f32 %v741_v51, %v735_v47  ;;  %v337_v58 = vmul.f32 %v741_v51, %v741_v51  ;;  %v403_v59 = vadd.f32 %v749_v55, %v743_v52  ;;  %v409_v0 = vmul.f32 %v749_v55, %v749_v55 }
  0xdb   :  { %182 = vadd.xlane.f32.xlu1 %v181_v49  ;;  %100 = vadd.xlane.f32.xlu0 %v99_v50  ;;  %v341_v1 = vadd.f32 %v337_v58, %v336_v60  ;;  %v413_v4 = vadd.f32 %v409_v0, %v408_v3  ;;  %v27_v60 = vld [vmem:[%s814_s3] sm:$0xff] }
  0xdf   :  { %332 = vadd.xlane.f32.xlu1 %v331_v53  ;;  %329 = vadd.xlane.f32.xlu0 %v328_v54 }
  0xe3   :  { %404 = vadd.xlane.f32.xlu1 %v403_v59  ;;  %401 = vadd.xlane.f32.xlu0 %v400_v56 }
  0xe7   :  { %342 = vadd.xlane.f32.xlu1 %v341_v1  ;;  %339 = vadd.xlane.f32.xlu0 %v338_v2 }
  0xeb   :  { %414 = vadd.xlane.f32.xlu1 %v413_v4  ;;  %411 = vadd.xlane.f32.xlu0 %v410_v5 }
 0x158   :  { %v170_v6 = vpop.xlane.xlu1 %169  ;;  %v98_v7 = vpop.xlane.xlu0 %97 }
 0x159   :  { %v184_v8 = vadd.f32 %v170_v6, %v98_v7  ;;  %v28_v6 = vld [vmem:[%s814_s3 + $0x8] sm:$0xff] }
 0x15b   :  { %v188_v11 = vmul.f32 0.001953125, %v184_v8 }
 0x15c   :  { %v173_v9 = vpop.xlane.xlu1 %172  ;;  %v108_v10 = vpop.xlane.xlu0 %107 }
 0x15d   :  { %v192_v15 = vmul.f32 %v188_v11, %v188_v11 }
 0x160   :  { %v180_v12 = vpop.xlane.xlu0 %179  ;;  %v111_v13 = vpop.xlane.xlu1 %110 }
 0x161   :  { %v186_v14 = vadd.f32 %v180_v12, %v108_v10 }
 0x163   :  { %v190_v16 = vmul.f32 0.001953125, %v186_v14 }
 0x164   :  { %v183_v17 = vpop.xlane.xlu1 %182  ;;  %v101_v18 = vpop.xlane.xlu0 %100 }
 0x165   :  { %v194_v19 = vsub.f32 %v190_v16, %v192_v15  ;;  %v187_v20 = vadd.f32 %v183_v17, %v111_v13  ;;  %v185_v21 = vadd.f32 %v173_v9, %v101_v18  ;;  %v29_v13 = vld [vmem:[%s815_s4] sm:$0xff] }
 0x167   :  { %v196_v26 = vmax.f32 %v194_v19, 0.0  ;;  %v189_v27 = vmul.f32 0.001953125, %v185_v21  ;;  %v191_v35 = vmul.f32 0.001953125, %v187_v20  ;;  %v30_v19 = vld [vmem:[%s815_s4 + $0x8] sm:$0xff]  ;;  %s629_s4 = smov [#allocation2]  }
 0x168   :  { %v333_v28 = vpop.xlane.xlu1 %332  ;;  %v330_v31 = vpop.xlane.xlu0 %329  ;;  %s510_s11 = sshll.u32 %s629_s4, 4  ;;  %s511_s11 = int_to_ptr.vmem [resolvable:$true] %s510_s11 }
 0x169   :  { %v198_v34 = vadd.f32 1e-05, %v196_v26  ;;  %v193_v36 = vmul.f32 %v189_v27, %v189_v27  ;;  %s584_s12 = scalar_lea.vmem %s511_s11, 512  ;;  %p589_p1 = scmp.lt.s32.totalorder %s511_s11, %s511_s11 }
 0x16a   :  { %p585_p0 = scmp.ne.s32.totalorder %s511_s11, %s584_s12  ;;  %p590_p2 = scmp.lt.s32.totalorder %s584_s12, %s584_s12 }
 0x16b   :  { %576 = vrsqrt.f32 %v198_v34  ;;  %v195_v37 = vsub.f32 %v191_v35, %v193_v36 }
 0x16c   :  { %v405_v38 = vpop.xlane.xlu1 %404  ;;  %v402_v41 = vpop.xlane.xlu0 %401  ;;  %p591_p3 = por %p590_p2, %p589_p1 }
 0x16d   :  { %v197_v43 = vmax.f32 %v195_v37, 0.0  ;;  %v416_v45 = vadd.f32 %v402_v41, %v330_v31  ;;  %v417_v46 = vadd.f32 %v405_v38, %v333_v28 }
 0x16e   :  { %p592_p4 = pnand %p591_p3, %p585_p0 }
 0x16f   :  { %v199_v44 = vadd.f32 1e-05, %v197_v43  ;;  %v420_v53 = vmul.f32 0.001953125, %v416_v45  ;;  %v421_v54 = vmul.f32 0.001953125, %v417_v46 }
 0x170   :  { %v343_v49 = vpop.xlane.xlu1 %342  ;;  %v340_v50 = vpop.xlane.xlu0 %339 }
 0x171   :  { %578 = vrsqrt.f32 %v199_v44  ;;  %v424_v61 = vmul.f32 %v420_v53, %v420_v53  ;;  %v425_v1 = vmul.f32 %v421_v54, %v421_v54 }
 0x174   :  { %v415_v56 = vpop.xlane.xlu1 %414  ;;  %v412_v57 = vpop.xlane.xlu0 %411 }
 0x175   :  { %v419_v58 = vadd.f32 %v415_v56, %v343_v49  ;;  %v418_v59 = vadd.f32 %v412_v57, %v340_v50 }
 0x177   :  { %v423_v62 = vmul.f32 0.001953125, %v419_v58  ;;  %v422_v63 = vmul.f32 0.001953125, %v418_v59 }
 0x178   :  { %v577_v0 = vpop.eup %576 }
 0x179   :  { %v426_v2 = vsub.f32 %v422_v63, %v424_v61  ;;  %v202_v3 = vmul.f32 %v577_v0, %v27_v60  ;;  %v427_v4 = vsub.f32 %v423_v62, %v425_v1 }
 0x17b   :  { %v428_v5 = vmax.f32 %v426_v2, 0.0  ;;  %210 = vperm.xlu0 %569, %v202_v3   ;;  %v429_v9 = vmax.f32 %v427_v4, 0.0  ;;  %v204_v12 = vmul.f32 %v202_v3, %v188_v11 }
 0x17d   :  { %v430_v7 = vadd.f32 1e-05, %v428_v5  ;;  %v431_v14 = vadd.f32 1e-05, %v429_v9  ;;  %v206_v15 = vsub.f32 %v29_v13, %v204_v12 }
 0x17e   :  { %v579_v8 = vpop.eup %578 }
 0x17f   :  { %v203_v10 = vmul.f32 %v579_v8, %v28_v6  ;;  %580 = vrsqrt.f32 %v430_v7 }
 0x180   :  { %582 = vrsqrt.f32 %v431_v14 }
 0x181   :  { %215 = vperm.xlu1 %570, %v203_v10   ;;  %v205_v17 = vmul.f32 %v203_v10, %v189_v27 }
 0x183   :  { %v207_v20 = vsub.f32 %v30_v19, %v205_v17 }
 0x185   :  { %224 = vperm.xlu1 %570, %v206_v15  }
 0x18c   :  { %v581_v16 = vpop.eup %580 }
 0x18d   :  { %v434_v18 = vmul.f32 %v581_v16, %v27_v60  ;;  %v583_v11 = vpop.eup %582 }
 0x18e   :  { %v435_v21 = vmul.f32 %v583_v11, %v28_v6 }
 0x18f   :  { %442 = vperm.xlu1 %570, %v434_v18   ;;  %v436_v26 = vmul.f32 %v434_v18, %v420_v53 }
 0x190   :  { %v437_v31 = vmul.f32 %v435_v21, %v421_v54 }
 0x191   :  { %v438_v28 = vsub.f32 %v29_v13, %v436_v26 }
 0x192   :  { %v439_v34 = vsub.f32 %v30_v19, %v437_v31 }
 0x193   :  { %229 = vperm.xlu1 %570, %v207_v20  }
 0x197   :  { %447 = vperm.xlu1 %570, %v435_v21  }
 0x19b   :  { %456 = vperm.xlu1 %570, %v438_v28  }
 0x19f   :  { %461 = vperm.xlu1 %570, %v439_v34  }
 0x1f6   :  { %v211_v35 = vpop.permute.xlu0 %210 }
 0x1f7   :  { %v218_v27 = vmul.f32 %v211_v35, %v691_v22  ;;  %v219_v37 = vmul.f32 %v211_v35, %v695_v24  ;;  %v250_v38 = vmul.f32 %v211_v35, %v693_v23  ;;  %v251_v41 = vmul.f32 %v211_v35, %v697_v25 }
 0x1fc   :  { %v216_v36 = vpop.permute.xlu1 %215 }
 0x1fd   :  { %v220_v56 = vmul.f32 %v216_v36, %v705_v29  ;;  %v221_v22 = vmul.f32 %v216_v36, %v711_v32  ;;  %v252_v24 = vmul.f32 %v216_v36, %v707_v30  ;;  %v253_v23 = vmul.f32 %v216_v36, %v713_v33 }
 0x200   :  { %v225_v43 = vpop.permute.xlu1 %224 }
 0x201   :  { %v232_v44 = vadd.f32 %v225_v43, %v218_v27  ;;  %v233_v45 = vadd.f32 %v225_v43, %v219_v37  ;;  %v254_v46 = vadd.f32 %v250_v38, %v225_v43  ;;  %v255_v49 = vadd.f32 %v251_v41, %v225_v43 }
 0x203   :  { %v556_v50 = vpack.c.bf16 %v233_v45, %v232_v44  ;;  %v558_v53 = vpack.c.bf16 %v255_v49, %v254_v46 }
 0x205   :  { %248 = vst [vmem:[#allocation2] sm:$0xff] %v556_v50  ;;  %271 = vst [vmem:[#allocation2 + $0x10] sm:$0xff] %v558_v53 }
 0x20a   :  { %v443_v54 = vpop.permute.xlu1 %442 }
 0x20e   :  { %v230_v25 = vpop.permute.xlu1 %229 }
 0x20f   :  { %v234_v57 = vadd.f32 %v230_v25, %v220_v56  ;;  %v235_v58 = vadd.f32 %v230_v25, %v221_v22  ;;  %v256_v59 = vadd.f32 %v252_v24, %v230_v25  ;;  %v257_v60 = vadd.f32 %v253_v23, %v230_v25 }
 0x211   :  { %v557_v61 = vpack.c.bf16 %v235_v58, %v234_v57  ;;  %v559_v62 = vpack.c.bf16 %v257_v60, %v256_v59 }
 0x212   :  { %v448_v63 = vpop.permute.xlu1 %447 }
 0x213   :  { %249 = vst [vmem:[#allocation2 + $0x8] sm:$0xff] %v557_v61  ;;  %272 = vst [vmem:[#allocation2 + $0x18] sm:$0xff] %v559_v62 }
 0x214   :  { %595 = shalt.err (!%p592_p4)
}
 0x215   :  { %s630_s13 = smov 128   ;;  %s631_s14 = smov 8   ;;  %v450_v29 = vmul.f32 %v443_v54, %v723_v39  ;;  %v451_v30 = vmul.f32 %v443_v54, %v729_v42  ;;  %v482_v32 = vmul.f32 %v443_v54, %v725_v40  ;;  %v483_v33 = vmul.f32 %v443_v54, %v737_v48 }
 0x216   :  { %516 = dma.vmem_to_hbm [thread:$0]  %s511_s11, 512, %s816_s5, [#allocation3], %s630_s13, %s630_s13, %s631_s14   ;;  %v457_v0 = vpop.permute.xlu1 %456  ;;  %v452_v5 = vmul.f32 %v448_v63, %v735_v47  ;;  %v453_v6 = vmul.f32 %v448_v63, %v741_v51  ;;  %v484_v9 = vmul.f32 %v448_v63, %v743_v52  ;;  %v485_v39 = vmul.f32 %v448_v63, %v749_v55 }
 0x217   :  { %v464_v1 = vadd.f32 %v457_v0, %v450_v29  ;;  %v465_v2 = vadd.f32 %v457_v0, %v451_v30  ;;  %v486_v3 = vadd.f32 %v482_v32, %v457_v0  ;;  %v487_v4 = vadd.f32 %v483_v33, %v457_v0  ;;  %s632_s5 = smov [#allocation4]  }
 0x218   :  { %s522_s17 = sshll.u32 %s632_s5, 4  ;;  %s523_s17 = int_to_ptr.vmem [resolvable:$true] %s522_s17 }
 0x219   :  { %v560_v7 = vpack.c.bf16 %v465_v2, %v464_v1  ;;  %v562_v8 = vpack.c.bf16 %v487_v4, %v486_v3  ;;  %s604_s18 = scalar_lea.vmem %s523_s17, 512  ;;  %p609_p6 = scmp.lt.s32.totalorder %s523_s17, %s523_s17 }
 0x21a   :  { %v462_v42 = vpop.permute.xlu1 %461  ;;  %p605_p5 = scmp.ne.s32.totalorder %s523_s17, %s604_s18  ;;  %p610_p7 = scmp.lt.s32.totalorder %s604_s18, %s604_s18 }
 0x21b   :  { %480 = vst [vmem:[#allocation4] sm:$0xff] %v560_v7  ;;  %503 = vst [vmem:[#allocation4 + $0x10] sm:$0xff] %v562_v8  ;;  %v466_v40 = vadd.f32 %v462_v42, %v452_v5  ;;  %v467_v48 = vadd.f32 %v462_v42, %v453_v6  ;;  %v488_v10 = vadd.f32 %v484_v9, %v462_v42 }
 0x21c   :  { %v489_v12 = vadd.f32 %v485_v39, %v462_v42  ;;  %p611_p8 = por %p610_p7, %p609_p6 }
 0x21d   :  { %v561_v13 = vpack.c.bf16 %v467_v48, %v466_v40 }
 0x21e   :  { %v563_v14 = vpack.c.bf16 %v489_v12, %v488_v10  ;;  %p612_p9 = pnand %p611_p8, %p605_p5 }
 0x21f   :  { %481 = vst [vmem:[#allocation4 + $0x8] sm:$0xff] %v561_v13 }
 0x220   :  { %504 = vst [vmem:[#allocation4 + $0x18] sm:$0xff] %v563_v14 }
 0x221   :  { %615 = shalt.err (!%p612_p9)
}
 0x222   :  { %528 = dma.vmem_to_hbm [thread:$0]  %s523_s17, 512, %s817_s6, [#allocation5], %s630_s13, %s630_s13, %s631_s14  }
 0x223   :  { %624 = dma.done.wait [#allocation3], 512  }
 0x224   :  { %625 = vsyncadd [#allocation3], 4294966784 }
 0x225   :  { %626 = dma.done.wait [#allocation5], 512  }
 0x226   :  { %627 = vsyncadd [#allocation5], 4294966784 }
 0x227   :  { %535 = vsyncpa [#allocation3], 1 }
 0x228   :  { %536 = vsyncpa [#allocation5], 1 }

</bundles_post_ra>
